<compile_context>
chip_gen: v7x
topology: tpu7x:2x2x1
jax: 0.10.0
libtpu: 0.0.40
codegen_flags: <defaults>
</compile_context>

<pallas_src>
import jax
import jax.numpy as jnp
from jax.experimental import pallas as pl
from jax.experimental.pallas import tpu as pltpu


def _round_up(x, m):
    return (x + m - 1) // m * m


def _fusion_kernel(w_ref, x_ref, o_ref):
    # w_ref: SMEM (nums,) f32          -- fusion weights (scalars)
    # x_ref: VMEM (nums, R, 128)       -- one dense tile of every input
    # o_ref: VMEM (R, 128)             -- weighted sum over the `nums` axis
    nums = x_ref.shape[0]
    # Hoist the scalar weight loads out of the unrolled accumulate loop.
    ws = [w_ref[i] for i in range(nums)]
    acc = x_ref[0].astype(jnp.float32) * ws[0]
    for i in range(1, nums):                     # static unroll, nums is small
        acc = acc + x_ref[i].astype(jnp.float32) * ws[i]
    o_ref[...] = acc.astype(o_ref.dtype)


def fusion_layer(x_stack, weights, *, vmem_block_budget_bytes=14 * 1024 * 1024):
    """x_stack: (nums, *per_shape); weights: (nums,). Returns per_shape array."""
    nums = x_stack.shape[0]
    per_shape = x_stack.shape[1:]
    dtype = x_stack.dtype

    M = 1
    for d in per_shape:
        M *= d

    # (nums, rows, 128) layout. Pad only if M is not a multiple of 8*128
    # (zeros are sliced off afterwards; no pad / no copy in the common case).
    Mp = _round_up(M, 8 * 128)
    x2d = x_stack.reshape(nums, M)
    if Mp != M:
        x2d = jnp.pad(x2d, ((0, 0), (0, Mp - M)))
    rows = Mp // 128
    x3d = x2d.reshape(nums, rows, 128)

    # Block rows R: multiple of 8, sized so double-buffered inputs + output
    # stay within a conservative VMEM budget (fits v5e/v6e/v7x defaults).
    itemsize = jnp.dtype(dtype).itemsize
    bytes_per_row = 128 * (2 * nums * itemsize + 2 * itemsize)
    R = max(8, (vmem_block_budget_bytes // bytes_per_row) // 8 * 8)
    R = min(R, rows)
    # Keep >= 2 parallel grid steps when the data allows it (2 TCs on v7x).
    if pl.cdiv(rows, R) == 1 and rows >= 16:
        R = max(8, _round_up(pl.cdiv(rows, 2), 8))
    grid = (pl.cdiv(rows, R),)

    w = weights.astype(jnp.float32)

    out3d = pl.pallas_call(
        _fusion_kernel,
        out_shape=jax.ShapeDtypeStruct((rows, 128), dtype),
        grid_spec=pltpu.PrefetchScalarGridSpec(
            num_scalar_prefetch=0,
            grid=grid,
            in_specs=[
                pl.BlockSpec(memory_space=pltpu.MemorySpace.SMEM),   # weights
                pl.BlockSpec((nums, R, 128), lambda j: (0, j, 0)),   # x tile
            ],
            out_specs=pl.BlockSpec((R, 128), lambda j: (j, 0)),
        ),
        compiler_params=pltpu.CompilerParams(
            dimension_semantics=("parallel",),
            vmem_limit_bytes=32 * 1024 * 1024,
        ),
    )(w, x3d)

    flat = out3d.reshape(Mp)
    if Mp != M:
        flat = flat[:M]
    return flat.reshape(per_shape)


if __name__ == "__main__":
    nums = 6
    B, C, H, W = 2, 4, 16, 16

    key = jax.random.PRNGKey(0)
    x_stack = jax.random.normal(key, (nums, B, C, H, W), dtype=jnp.float32)

    # Deterministic parameter init, same as nn.init.constant_(weights, 1/nums)
    weights = jnp.full((nums,), 1.0 / nums, dtype=jnp.float32)

    out = fusion_layer(x_stack, weights)
    out = jax.block_until_ready(out)

    # Pure-JAX reference check of the forward semantics.
    ref = jnp.einsum(
        "n,nbchw->bchw",
        weights.astype(jnp.float32),
        x_stack.astype(jnp.float32),
    ).astype(x_stack.dtype)
    assert out.shape == (B, C, H, W)
    assert jnp.allclose(out, ref, atol=1e-5, rtol=1e-5)

    print("KERNEL_OK")
</pallas_src>

<mosaic_0001>
module attributes {stable_mosaic.version = 11 : i64} {
  func.func @_fusion_kernel(%arg0: i32, %arg1: memref<6xf32, #tpu.memory_space<smem>>, %arg2: memref<6x8x128xf32, #tpu.memory_space<vmem>>, %arg3: memref<8x128xf32, #tpu.memory_space<vmem>>) attributes {dimension_semantics = [#tpu.dimension_semantics<parallel>], iteration_bounds = array<i64: 2>, scalar_prefetch = 0 : i64, scratch_operands = 0 : i64, tpu.core_type = #tpu.core_type<tc>, window_params = [{transform_indices = @transform_0, window_bounds = array<i64: 6>}, {transform_indices = @transform_1, window_bounds = array<i64: 6, 8, 128>}, {transform_indices = @transform_2, window_bounds = array<i64: 8, 128>}]} {
    %c0 = arith.constant 0 : index
    %0 = memref.load %arg1[%c0] : memref<6xf32, #tpu.memory_space<smem>>
    %c1 = arith.constant 1 : index
    %1 = memref.load %arg1[%c1] : memref<6xf32, #tpu.memory_space<smem>>
    %c2 = arith.constant 2 : index
    %2 = memref.load %arg1[%c2] : memref<6xf32, #tpu.memory_space<smem>>
    %c3 = arith.constant 3 : index
    %3 = memref.load %arg1[%c3] : memref<6xf32, #tpu.memory_space<smem>>
    %c4 = arith.constant 4 : index
    %4 = memref.load %arg1[%c4] : memref<6xf32, #tpu.memory_space<smem>>
    %c5 = arith.constant 5 : index
    %5 = memref.load %arg1[%c5] : memref<6xf32, #tpu.memory_space<smem>>
    %c0_0 = arith.constant 0 : index
    %c0_1 = arith.constant 0 : index
    %c0_2 = arith.constant 0 : index
    %6 = vector.load %arg2[%c0_0, %c0_1, %c0_2] : memref<6x8x128xf32, #tpu.memory_space<vmem>>, vector<1x8x128xf32>
    %7 = vector.shape_cast %6 : vector<1x8x128xf32> to vector<8x128xf32>
    %8 = vector.broadcast %0 : f32 to vector<8x128xf32>
    %9 = arith.mulf %7, %8 : vector<8x128xf32>
    %c1_3 = arith.constant 1 : index
    %c0_4 = arith.constant 0 : index
    %c0_5 = arith.constant 0 : index
    %10 = vector.load %arg2[%c1_3, %c0_4, %c0_5] : memref<6x8x128xf32, #tpu.memory_space<vmem>>, vector<1x8x128xf32>
    %11 = vector.shape_cast %10 : vector<1x8x128xf32> to vector<8x128xf32>
    %12 = vector.broadcast %1 : f32 to vector<8x128xf32>
    %13 = arith.mulf %11, %12 : vector<8x128xf32>
    %14 = arith.addf %9, %13 : vector<8x128xf32>
    %c2_6 = arith.constant 2 : index
    %c0_7 = arith.constant 0 : index
    %c0_8 = arith.constant 0 : index
    %15 = vector.load %arg2[%c2_6, %c0_7, %c0_8] : memref<6x8x128xf32, #tpu.memory_space<vmem>>, vector<1x8x128xf32>
    %16 = vector.shape_cast %15 : vector<1x8x128xf32> to vector<8x128xf32>
    %17 = vector.broadcast %2 : f32 to vector<8x128xf32>
    %18 = arith.mulf %16, %17 : vector<8x128xf32>
    %19 = arith.addf %14, %18 : vector<8x128xf32>
    %c3_9 = arith.constant 3 : index
    %c0_10 = arith.constant 0 : index
    %c0_11 = arith.constant 0 : index
    %20 = vector.load %arg2[%c3_9, %c0_10, %c0_11] : memref<6x8x128xf32, #tpu.memory_space<vmem>>, vector<1x8x128xf32>
    %21 = vector.shape_cast %20 : vector<1x8x128xf32> to vector<8x128xf32>
    %22 = vector.broadcast %3 : f32 to vector<8x128xf32>
    %23 = arith.mulf %21, %22 : vector<8x128xf32>
    %24 = arith.addf %19, %23 : vector<8x128xf32>
    %c4_12 = arith.constant 4 : index
    %c0_13 = arith.constant 0 : index
    %c0_14 = arith.constant 0 : index
    %25 = vector.load %arg2[%c4_12, %c0_13, %c0_14] : memref<6x8x128xf32, #tpu.memory_space<vmem>>, vector<1x8x128xf32>
    %26 = vector.shape_cast %25 : vector<1x8x128xf32> to vector<8x128xf32>
    %27 = vector.broadcast %4 : f32 to vector<8x128xf32>
    %28 = arith.mulf %26, %27 : vector<8x128xf32>
    %29 = arith.addf %24, %28 : vector<8x128xf32>
    %c5_15 = arith.constant 5 : index
    %c0_16 = arith.constant 0 : index
    %c0_17 = arith.constant 0 : index
    %30 = vector.load %arg2[%c5_15, %c0_16, %c0_17] : memref<6x8x128xf32, #tpu.memory_space<vmem>>, vector<1x8x128xf32>
    %31 = vector.shape_cast %30 : vector<1x8x128xf32> to vector<8x128xf32>
    %32 = vector.broadcast %5 : f32 to vector<8x128xf32>
    %33 = arith.mulf %31, %32 : vector<8x128xf32>
    %34 = arith.addf %29, %33 : vector<8x128xf32>
    %c0_18 = arith.constant 0 : index
    %c0_19 = arith.constant 0 : index
    %35 = vector.load %arg3[%c0_18, %c0_19] : memref<8x128xf32, #tpu.memory_space<vmem>>, vector<8x128xf32>
    tpu.vector_store %arg3[%c0_18, %c0_19], %34 {strides = array<i32>} : memref<8x128xf32, #tpu.memory_space<vmem>>, vector<8x128xf32>,
    return
  }
  func.func @transform_0(%arg0: i32) -> i32 {
    %c0_i32 = arith.constant 0 : i32
    %c0_i32_0 = arith.constant 0 : i32
    return %c0_i32 : i32
  }
  func.func @transform_1(%arg0: i32) -> (i32, i32, i32) {
    %c0_i32 = arith.constant 0 : i32
    %c0_i32_0 = arith.constant 0 : i32
    %c0_i32_1 = arith.constant 0 : i32
    return %c0_i32, %arg0, %c0_i32_0 : i32, i32, i32
  }
  func.func @transform_2(%arg0: i32) -> (i32, i32) {
    %c0_i32 = arith.constant 0 : i32
    %c0_i32_0 = arith.constant 0 : i32
    return %arg0, %c0_i32 : i32, i32
  }
}

</mosaic_0001>

<bundles_post_ra>
// kernel: tpu_custom_call.1
= control target key start
LH: loop header
LB: loop body
LE: loop exit
PB: predicated region body
PF: predicated region fallthrough
CT: control target
= control target key end

     0   :  { %7 = vsyncpa [#allocation5], 0  ;;  %s713_s0 = inlined_call_operand.hbm [shape: f32[6], index: 0, kind: input, shape index: {}]   ;;  %s714_s1 = inlined_call_operand.hbm [shape: f32[6,16,128], index: 1, kind: input, shape index: {}]   ;;  %s715_s2 = inlined_call_operand.hbm [shape: f32[16,128], index: 2, kind: output, shape index: {}]  }
   0x1   :  { %8 = vsyncpa [#allocation3], 0 }
   0x2   :  { %10 = vsyncpa [#allocation3 + $0x1], 0 }
   0x3   :  { %11 = vsyncpa [#allocation4], 0 }
   0x4   :  { %13 = vsyncpa [#allocation4 + $0x1], 0  ;;  %s524_s9 = smov 0   ;;  %s526_s10 = smov 0  }
   0x5   :  { %s528_s11 = smov 0   ;;  %s530_s12 = smov 0  }
   0x6 LB: > { %s545_s13 = sadd.s32 4294967295, %s501_s12   ;;  %s304_s14 = sadd.s32 4294967294, %s501_s12   ;;  %s501_s12 = sphi %s530_s12, %s735_s12   ;;  %s497_s11 = sphi %s528_s11, %s734_s11   ;;  %s493_s10 = sphi %s526_s10, %s733_s10   ;;  %s489_s9 = sphi %s524_s9, %s732_s9  }
   0x7   : > { %s549_s15 = sadd.s32 1, %s501_s12   ;;  %s47_s16 = sadd.s32 1, %s497_s11 }
   0x8   : > { %s44_s17 = ssub.s32 %s501_s12, %s549_s15  ;;  %p54_p0 = scmp.ne.s32.totalorder %s497_s11, %s493_s10 }
   0x9   : > { %p45_p1 = scmp.eq.s32.totalorder %s44_s17, 0  ;;  %p55_p2 = scmp.eq.s32.totalorder %s501_s12, 0 }
   0xa   : > { %p60_p3 = scmp.ne.s32.totalorder %s493_s10, %s489_s9  ;;  %p716_p4 = scmp.eq.s32.totalorder %s545_s13, 0 }
   0xb   : > { %s561_s18 = scalar_select %p45_p1, %s497_s11, %s47_s16  }
   0xc   : > { %p563_p5 = por %p55_p2, %p54_p0  ;;  %p569_p6 = por %p716_p4, %p60_p3 }
   0xd   : > { %p84_p7 = scmp.eq.s32.totalorder %s545_s13, 1  ;;  %p90_p8 = scmp.eq.s32.totalorder %s304_s14, 1 }
   0xe   : > { %s720_s20 = scalar_select %p569_p6, 1, 0 }
   0xf   : > { %p305_p9 = scmp.ge.s32.totalorder %s501_s12, 1  ;;  %p97_p10 = scmp.lt.s32.totalorder %s501_s12, 3 }
  0x10   : > { %p576_p11 = por %p84_p7, %p54_p0  ;;  %p580_p12 = por %p90_p8, %p60_p3 }
  0x11   : > { %p584_p13 = pnand %p305_p9, %p97_p10  ;;  %p349_p4 = scmp.lt.s32.totalorder %s501_s12, 2 }
  0x12   : > { %s721_s21 = scalar_select %p576_p11, 1, 0 }
  0x13   : > { %s722_s22 = scalar_select %p580_p12, 1, 0 }
  0x14   : > { %p336_p2 = pneg %p584_p13  ;;  %s119_s24 = sand.u32 1, %s497_s11  }
  0x15   : > { %s308_s25 = sshll.u32 %s501_s12, 7  ;;  %p724_p6 = scmp.eq.s32.totalorder %s545_s13, 0 }
  0x16   : > { %p598_p7 = pnand %p349_p4, %p563_p5  ;;  %s326_s27 = smul.u32 48, %s119_s24 }
  0x17   : > { %p337_p0 = pnand %p336_p2, %p724_p6  ;;  %s388_s30 = scalar_lea.hbm %s713_s0, 16 }
  0x18   : > { %p389_p3 = scmp.ne.s32.totalorder %s713_s0, %s388_s30  ;;  %p395_p6 = scmp.lt.u32.totalorder %s388_s30, %s713_s0 }
  0x19   : > { %p390_p8 = pneg %p337_p0 }
  0x1b   : > { %p391_p9 = pnand %p390_p8, %p389_p3 }
  0x1d   : > { %p392_p10 = pneg %p391_p9 }
  0x1f   : > { %p397_p4 = pnand %p395_p6, %p392_p10 }
  0x21   : > { %400 = shalt.err (!%p397_p4)
}
  0x22   : > { %s503_s7 = smov [#allocation2]   ;;  %s617_s19 = scalar_lea.hbm %s714_s1, %s308_s25 }
  0x23   : > { %339 = dma.hbm_to_smem (!%p337_p0), %s713_s0, 16, %s503_s7, [#allocation5]  }
  0x24   : > { %s123_s28 = scalar_lea.vmem [#allocation6], %s326_s27  ;;  %s621_s30 = scalar_lea.sflag [#allocation3], %s119_s24 }
  0x25   : > { %s129_s29 = sshll.u32 %s123_s28, 4  ;;  %s401_s3 = scalar_lea.hbm %s617_s19, 768  ;;  %s619_s29 = int_to_ptr.vmem [resolvable:$true] %s129_s29 }
  0x26   : > { %p402_p5 = scmp.ne.s32.totalorder %s617_s19, %s401_s3  ;;  %p403_p2 = pneg %p598_p7 }
  0x27   : > { %s406_s5 = scalar_lea.hbm %s714_s1, 1536  ;;  %p407_p8 = scmp.lt.u32.totalorder %s617_s19, %s714_s1 }
  0x28   : > { %p404_p0 = pnand %p403_p2, %p402_p5  ;;  %p408_p9 = scmp.lt.u32.totalorder %s406_s5, %s401_s3 }
  0x29   : > { %p410_p6 = scmp.lt.u32.totalorder %s401_s3, %s617_s19 }
  0x2a   : > { %p405_p3 = pneg %p404_p0  ;;  %p409_p10 = por %p408_p9, %p407_p8 }
  0x2c   : > { %p411_p4 = por %p410_p6, %p409_p10 }
  0x2e   : > { %p412_p1 = pnand %p411_p4, %p405_p3 }
  0x30   : > { %415 = shalt.err (!%p412_p1)
}
  0x31   : > { %s416_s24 = scalar_lea.vmem %s619_s29, 768  ;;  %s504_s27 = smov [#allocation6]  }
  0x32   : > { %p417_p5 = scmp.ne.s32.totalorder %s619_s29, %s416_s24  ;;  %s421_s8 = sshll.u32 %s504_s27, 4  ;;  %s422_s8 = int_to_ptr.vmem [resolvable:$false] %s421_s8 }
  0x33   : > { %s423_s14 = scalar_lea.vmem %s422_s8, 1536  ;;  %p424_p11 = scmp.lt.s32.totalorder %s619_s29, %s422_s8 }
  0x34   : > { %p419_p0 = pnand %p417_p5, %p403_p2  ;;  %p425_p8 = scmp.lt.s32.totalorder %s423_s14, %s416_s24 }
  0x36   : > { %p420_p12 = pneg %p419_p0  ;;  %p426_p9 = por %p425_p8, %p424_p11 }
  0x38   : > { %p427_p10 = pnand %p426_p9, %p420_p12 }
  0x3a   : > { %430 = shalt.err (!%p427_p10)
}
  0x3b   : > { %s505_s16 = smov 256   ;;  %s506_s17 = smov 128  }
  0x3c   : > { %s507_s28 = smov 8   ;;  %141 = sbr.rel (%p584_p13) target bundleno = 108 (0x6c), region = 28 }
  0x3d   : > { %343 = dma.hbm_to_vmem [thread:$0]  (!%p598_p7), %s617_s19, 768, %s619_s29, %s621_s30, %s505_s16, %s506_s17, %s507_s28  }
  0x3e   : > { %p726_p1 = scmp.eq.s32.totalorder (!%p584_p13), %s545_s13, 0 }
  0x43   : > { %476 = dma.done.wait (%p726_p1), [#allocation5], 16   ;;  %p727_p2 = pmov %p726_p1 }
  0x44   : > { %s656_s3 = sand.u32 1, %s493_s10   ;;  %p728_p11 = scmp.ne.s32.totalorder %s720_s20, 0 }
  0x45   : > { %478 = vsyncadd (%p727_p2), [#allocation5], 4294967280  ;;  %s327_s25 = smul.u32 48, %s656_s3  ;;  %s148_s4 = scalar_lea.sflag [#allocation3], %s656_s3 }
  0x47   : > { %s151_s5 = scalar_lea.vmem [#allocation6], %s327_s25 }
  0x48   : > { %480 = dma.done.wait (%p728_p11), %s148_s4, 768  }
  0x49   : > { %482 = vsyncadd (%p728_p11), %s148_s4, 4294966528 }
  0x4a   : > { %156 = sfence }
  0x4b   : > { %s173_s23 = sld [smem:[#allocation2]]  ;;  %s312_s26 = sld [smem:[#allocation2 + $0x1]]  ;;  %v179_v0 = vld [vmem:[%s151_s5] sm:$0xff]  ;;  %v317_v1 = vld [vmem:[%s151_s5 + $0x8] sm:$0xff]  ;;  %v318_v3 = vld [vmem:[%s151_s5 + $0x10] sm:$0xff] }
  0x4c   : > { %s313_s19 = sld [smem:[#allocation2 + $0x2]]  ;;  %s314_s29 = sld [smem:[#allocation2 + $0x3]]  ;;  %v319_v6 = vld [vmem:[%s151_s5 + $0x18] sm:$0xff]  ;;  %v320_v11 = vld [vmem:[%s151_s5 + $0x20] sm:$0xff]  ;;  %v321_v15 = vld [vmem:[%s151_s5 + $0x28] sm:$0xff] }
  0x4d   : > { %s315_s30 = sld [smem:[#allocation2 + $0x4]]  ;;  %s316_s6 = sld [smem:[#allocation2 + $0x5]] }
  0x4e   : > { %s311_s20 = sshll.u32 %s656_s3, 3  ;;  %s323_s27 = sshll.u32 %s545_s13, 7 }
  0x4f   : > { %s172_s7 = scalar_lea.vmem [#allocation7], %s311_s20  ;;  %s671_s16 = scalar_lea.hbm %s715_s2, %s323_s27 }
  0x50   : > { %s222_s24 = sshll.u32 %s172_s7, 4  ;;  %s209_s17 = scalar_lea.sflag [#allocation4], %s656_s3  ;;  %s666_s24 = int_to_ptr.vmem [resolvable:$true] %s222_s24 }
  0x51   : > { %v180_v2 = vstv %s173_s23  ;;  %v184_v5 = vstv %s312_s26  ;;  %s431_s28 = scalar_lea.vmem %s666_s24, 128  ;;  %p729_p13 = scmp.ne.s32.totalorder %s721_s21, 0 }
  0x52   : > { %v181_v4 = vmul.f32 %v180_v2, %v179_v0  ;;  %v185_v7 = vmul.f32 %v317_v1, %v184_v5  ;;  %v189_v8 = vstv %s313_s19  ;;  %v194_v9 = vstv %s314_s29  ;;  %p432_p12 = scmp.ne.s32.totalorder %s666_s24, %s431_s28  ;;  %s508_s13 = smov [#allocation7]  }
  0x53   : > { %v190_v10 = vmul.f32 %v318_v3, %v189_v8  ;;  %v199_v12 = vstv %s315_s30  ;;  %v195_v14 = vmul.f32 %v319_v6, %v194_v9  ;;  %v204_v16 = vstv %s316_s6  ;;  %s435_s25 = sshll.u32 %s508_s13, 4  ;;  %s436_s25 = int_to_ptr.vmem [resolvable:$false] %s435_s25 }
  0x54   : > { %v186_v13 = vadd.f32 %v185_v7, %v181_v4  ;;  %v200_v18 = vmul.f32 %v320_v11, %v199_v12  ;;  %v205_v20 = vmul.f32 %v321_v15, %v204_v16  ;;  %p433_p7 = pnand %p432_p12, %p729_p13  ;;  %s437_s4 = scalar_lea.vmem %s436_s25, 256 }
  0x55   : > { %p438_p6 = scmp.lt.s32.totalorder %s666_s24, %s436_s25  ;;  %p439_p4 = scmp.lt.s32.totalorder %s437_s4, %s431_s28 }
  0x56   : > { %v191_v17 = vadd.f32 %v190_v10, %v186_v13  ;;  %p434_p3 = pneg %p433_p7 }
  0x57   : > { %p440_p5 = por %p439_p4, %p438_p6 }
  0x58   : > { %v196_v19 = vadd.f32 %v195_v14, %v191_v17 }
  0x59   : > { %p441_p0 = pnand %p440_p5, %p434_p3 }
  0x5a   : > { %v201_v21 = vadd.f32 %v200_v18, %v196_v19 }
  0x5c   : > { %v206_v22 = vadd.f32 %v205_v20, %v201_v21 }
  0x5e   : > { %207 = vst [vmem:[%s172_s7] sm:$0xff] %v206_v22 }
  0x5f   : > { %444 = shalt.err (!%p441_p0)
}
  0x60   : > { %s445_s3 = scalar_lea.hbm %s671_s16, 128  ;;  %s449_s26 = scalar_lea.hbm %s715_s2, 256 }
  0x61   : > { %p446_p8 = scmp.ne.s32.totalorder %s671_s16, %s445_s3  ;;  %p450_p1 = scmp.lt.u32.totalorder %s671_s16, %s715_s2 }
  0x62   : > { %p451_p2 = scmp.lt.u32.totalorder %s449_s26, %s445_s3  ;;  %p453_p12 = scmp.lt.u32.totalorder %s445_s3, %s671_s16 }
  0x63   : > { %p447_p9 = pnand %p446_p8, %p729_p13 }
  0x64   : > { %p452_p11 = por %p451_p2, %p450_p1 }
  0x65   : > { %p448_p10 = pneg %p447_p9 }
  0x66   : > { %p454_p7 = por %p453_p12, %p452_p11 }
  0x68   : > { %p455_p3 = pnand %p454_p7, %p448_p10 }
  0x6a   : > { %458 = shalt.err (!%p455_p3)
}
  0x6b   : > { %334 = dma.vmem_to_hbm [thread:$0]  (%p729_p13), %s666_s24, 128, %s671_s16, %s209_s17  }
  0x6c PF: > { %s234_s30 = sand.u32 1, %s489_s9   ;;  %p730_p6 = scmp.ne.s32.totalorder %s722_s22, 0 }
  0x6d   : > { %p731_p4 = scmp.ge.s32.totalorder %s501_s12, 2  ;;  %s235_s6 = scalar_lea.sflag [#allocation4], %s234_s30 }
  0x6f   : > { %p345_p5 = pnand %p731_p4, %p730_p6 }
  0x71   : > { %484 = dma.done.wait (!%p345_p5), %s235_s6, 128  }
  0x72   : > { %486 = vsyncadd (!%p345_p5), %s235_s6, 4294967168  ;;  %p16_p0 = scmp.ge.s32.totalorder %s549_s15, 4   ;;  %s732_s9 = smov %s493_s10 }
  0x73   : > { %s733_s10 = smov %s497_s11  ;;  %s734_s11 = smov %s561_s18 }
  0x74   : > { %s735_s12 = smov %s549_s15  ;;  %18 = sbr.rel (!%p16_p0) target bundleno = 6 (0x6), region = 83 }
  0x7b   :  { %240 = vsyncpa [#allocation3], 1 }
  0x7c   :  { %242 = vsyncpa [#allocation3 + $0x1], 1 }
  0x7d   :  { %243 = vsyncpa [#allocation4], 1 }
  0x7e   :  { %245 = vsyncpa [#allocation4 + $0x1], 1 }
  0x7f   :  { %246 = vsyncpa [#allocation5], 1 }
  0x80   :  { %248 = vsyncpa [#allocation5 + $0x1], 1 }

</bundles_post_ra>
